<compile_context>
chip_gen: v7x
topology: tpu7x:2x2x1
jax: 0.10.0
libtpu: 0.0.40
codegen_flags: <defaults>
</compile_context>

<pallas_src>
import math

import jax
import jax.numpy as jnp
from jax.experimental import pallas as pl
from jax.experimental.pallas import tpu as pltpu


# ----------------------------------------------------------------------------
# Kernel 1: dense (H->H) + gelu + LayerNorm   (BertPredictionHeadTransform)
#   x_ref:     (tm, H)   compute dtype (f32 or bf16)
#   w_ref:     (H, H)    compute dtype, (in, out) layout -> plain x @ W
#   b/gamma/beta: (1, H) f32
#   o_ref:     (tm, H)   compute dtype
# ----------------------------------------------------------------------------
def _transform_kernel(x_ref, w_ref, b_ref, gamma_ref, beta_ref, o_ref):
    # Matmul on MXU, f32 accumulation.
    h = jnp.dot(x_ref[...], w_ref[...], preferred_element_type=jnp.float32)
    h = h + b_ref[...]

    # exact gelu: x * 0.5 * (1 + erf(x / sqrt(2)))  -- f32 epilogue
    h = h * 0.5 * (1.0 + jax.lax.erf(h * (1.0 / math.sqrt(2.0))))

    # BertLayerNorm (TF style, eps inside sqrt), reduce over last axis.
    u = jnp.mean(h, axis=-1, keepdims=True)
    s = jnp.mean((h - u) ** 2, axis=-1, keepdims=True)
    h = (h - u) * jax.lax.rsqrt(s + 1e-12)          # rsqrt -> EUP slot
    o_ref[...] = (gamma_ref[...] * h + beta_ref[...]).astype(o_ref.dtype)


# ----------------------------------------------------------------------------
# Kernel 2: decoder matmul  h @ E^T + bias   ((T, V) tiled)
#   h_ref: (tm, H)   compute dtype
#   e_ref: (tv, H)   compute dtype
#   b_ref: (1, tv)   f32
#   o_ref: (tm, tv)  f32
# ----------------------------------------------------------------------------
def _decoder_kernel(h_ref, e_ref, b_ref, o_ref):
    # Contract h dim 1 with e dim 1 directly (A . B^T form on MXU),
    # no explicit transpose of the embedding tile.
    logits = jax.lax.dot_general(
        h_ref[...], e_ref[...],
        dimension_numbers=(((1,), (1,)), ((), ())),
        preferred_element_type=jnp.float32)
    o_ref[...] = (logits + b_ref[...]).astype(o_ref.dtype)


def _round_up(x, m):
    return (x + m - 1) // m * m


# ----------------------------------------------------------------------------
# Wrapper
# ----------------------------------------------------------------------------
def bert_lm_prediction_head(hidden_states, params, *, t_tile=256,
                            vocab_tile=512, compute_dtype=None):
    """hidden_states: (B, S, H). Returns logits (B, S, V) in float32.

    compute_dtype: dtype of the matmul inputs (f32 accumulation either way).
      Use jnp.bfloat16 on v6e/v7x for ~2-4x MXU throughput on the decoder.
    """
    B, S, H = hidden_states.shape
    T = B * S
    if compute_dtype is None:
        compute_dtype = hidden_states.dtype

    x = hidden_states.reshape(T, H).astype(compute_dtype)

    w_dense_t = params["dense_w"].T.astype(compute_dtype)          # (H, H) (in, out)
    b_dense = params["dense_b"].astype(jnp.float32).reshape(1, H)
    gamma = params["ln_w"].astype(jnp.float32).reshape(1, H)
    beta = params["ln_b"].astype(jnp.float32).reshape(1, H)
    emb = params["decoder_w"].astype(compute_dtype)                # (V, H)
    dec_bias = params["decoder_b"].astype(jnp.float32)             # (V,)
    V = emb.shape[0]

    # ---- token-axis tiling: tm multiple of 8 (sublane), pad T up to it ----
    tm = min(t_tile, _round_up(T, 8))
    T_pad = _round_up(T, tm)
    if T_pad != T:
        x = jnp.pad(x, ((0, T_pad - T), (0, 0)))

    # ---- vocab-axis tiling: tv multiple of 128 (lane), pad V up to it ----
    tv = min(vocab_tile, _round_up(V, 128))
    V_pad = _round_up(V, tv)
    if V_pad != V:
        emb = jnp.pad(emb, ((0, V_pad - V), (0, 0)))
        dec_bias = jnp.pad(dec_bias, (0, V_pad - V))
    dec_bias = dec_bias.reshape(1, V_pad)

    vmem_cap = 32 * 1024 * 1024  # explicit; safe on v5e/v6e/v7x scoped VMEM

    # ---- transform kernel: tiled over T, weight/params resident ----
    h = pl.pallas_call(
        _transform_kernel,
        out_shape=jax.ShapeDtypeStruct((T_pad, H), compute_dtype),
        grid_spec=pltpu.PrefetchScalarGridSpec(
            num_scalar_prefetch=0,
            grid=(T_pad // tm,),
            in_specs=[
                pl.BlockSpec((tm, H), lambda i: (i, 0)),
                pl.BlockSpec((H, H), lambda i: (0, 0)),
                pl.BlockSpec((1, H), lambda i: (0, 0)),
                pl.BlockSpec((1, H), lambda i: (0, 0)),
                pl.BlockSpec((1, H), lambda i: (0, 0)),
            ],
            out_specs=pl.BlockSpec((tm, H), lambda i: (i, 0)),
        ),
        compiler_params=pltpu.CompilerParams(
            dimension_semantics=("parallel",),
            vmem_limit_bytes=vmem_cap),
    )(x, w_dense_t, b_dense, gamma, beta)

    # ---- decoder kernel: 2-D (T, V) tiled, both axes parallel ----
    # TODO(synk): the two kernels could be fused (transform under
    # pl.when(j == 0) into a VMEM scratch) to save the h HBM round trip.
    logits = pl.pallas_call(
        _decoder_kernel,
        out_shape=jax.ShapeDtypeStruct((T_pad, V_pad), jnp.float32),
        grid_spec=pltpu.PrefetchScalarGridSpec(
            num_scalar_prefetch=0,
            grid=(T_pad // tm, V_pad // tv),
            in_specs=[
                pl.BlockSpec((tm, H), lambda i, j: (i, 0)),
                pl.BlockSpec((tv, H), lambda i, j: (j, 0)),
                pl.BlockSpec((1, tv), lambda i, j: (0, j)),
            ],
            out_specs=pl.BlockSpec((tm, tv), lambda i, j: (i, j)),
        ),
        compiler_params=pltpu.CompilerParams(
            dimension_semantics=("parallel", "parallel"),
            vmem_limit_bytes=vmem_cap),
    )(h, emb, dec_bias)

    return logits[:T, :V].reshape(B, S, V)


# ----------------------------------------------------------------------------
# Pure-JAX reference for sanity check
# ----------------------------------------------------------------------------
def _reference(hidden_states, params):
    x = hidden_states.astype(jnp.float32)
    h = x @ params["dense_w"].T + params["dense_b"]
    h = h * 0.5 * (1.0 + jax.lax.erf(h / jnp.sqrt(2.0)))
    u = jnp.mean(h, axis=-1, keepdims=True)
    s = jnp.mean((h - u) ** 2, axis=-1, keepdims=True)
    h = (h - u) / jnp.sqrt(s + 1e-12)
    h = params["ln_w"] * h + params["ln_b"]
    return h @ params["decoder_w"].T + params["decoder_b"]


if __name__ == "__main__":
    # Small shapes consistent with the module. V=300 is deliberately NOT a
    # multiple of 128 to exercise the vocab-padding path.
    B, S, H, V = 2, 8, 128, 300

    key = jax.random.PRNGKey(0)
    k1, k2, k3, k4 = jax.random.split(key, 4)

    hidden_states = jax.random.normal(k1, (B, S, H), dtype=jnp.float32)

    params = {
        "dense_w": 0.02 * jax.random.normal(k2, (H, H), dtype=jnp.float32),
        "dense_b": 0.01 * jax.random.normal(k4, (H,), dtype=jnp.float32),
        "ln_w": jnp.ones((H,), dtype=jnp.float32),
        "ln_b": jnp.zeros((H,), dtype=jnp.float32),
        # bert_model_embedding_weights: (vocab, hidden)
        "decoder_w": 0.02 * jax.random.normal(k3, (V, H), dtype=jnp.float32),
        "decoder_b": jnp.zeros((V,), dtype=jnp.float32),
    }

    ref = _reference(hidden_states, params)

    # f32 compute path: must match the reference tightly.
    out = bert_lm_prediction_head(hidden_states, params)
    out = jax.block_until_ready(out)
    assert out.shape == (B, S, V)
    assert jnp.allclose(out, ref, atol=1e-4, rtol=1e-4), "f32 mismatch vs ref"

    # bf16 matmul-input path (f32 accumulation): looser tolerance.
    out_bf16 = bert_lm_prediction_head(hidden_states, params,
                                       compute_dtype=jnp.bfloat16)
    out_bf16 = jax.block_until_ready(out_bf16)
    assert out_bf16.shape == (B, S, V)
    assert jnp.allclose(out_bf16, ref, atol=5e-2, rtol=5e-2), \
        "bf16 mismatch vs ref"

    print("KERNEL_OK")
</pallas_src>

<mosaic_0001>
module attributes {stable_mosaic.version = 11 : i64} {
  func.func @_transform_kernel(%arg0: i32, %arg1: memref<16x128xf32, #tpu.memory_space<vmem>>, %arg2: memref<128x128xf32, #tpu.memory_space<vmem>>, %arg3: memref<1x128xf32, #tpu.memory_space<vmem>>, %arg4: memref<1x128xf32, #tpu.memory_space<vmem>>, %arg5: memref<1x128xf32, #tpu.memory_space<vmem>>, %arg6: memref<16x128xf32, #tpu.memory_space<vmem>>) attributes {dimension_semantics = [#tpu.dimension_semantics<parallel>], iteration_bounds = array<i64: 1>, scalar_prefetch = 0 : i64, scratch_operands = 0 : i64, tpu.core_type = #tpu.core_type<tc>, window_params = [{transform_indices = @transform_0, window_bounds = array<i64: 16, 128>}, {pipeline_mode = #tpu.pipeline_mode<synchronous>, transform_indices = @transform_1, window_bounds = array<i64: 128, 128>}, {pipeline_mode = #tpu.pipeline_mode<synchronous>, transform_indices = @transform_2, window_bounds = array<i64: 1, 128>}, {pipeline_mode = #tpu.pipeline_mode<synchronous>, transform_indices = @transform_3, window_bounds = array<i64: 1, 128>}, {pipeline_mode = #tpu.pipeline_mode<synchronous>, transform_indices = @transform_4, window_bounds = array<i64: 1, 128>}, {transform_indices = @transform_5, window_bounds = array<i64: 16, 128>}]} {
    %c0 = arith.constant 0 : index
    %c0_0 = arith.constant 0 : index
    %0 = vector.load %arg1[%c0, %c0_0] : memref<16x128xf32, #tpu.memory_space<vmem>>, vector<16x128xf32>
    %c0_1 = arith.constant 0 : index
    %c0_2 = arith.constant 0 : index
    %1 = vector.load %arg2[%c0_1, %c0_2] : memref<128x128xf32, #tpu.memory_space<vmem>>, vector<128x128xf32>
    %cst = arith.constant dense<0.000000e+00> : vector<16x128xf32>
    %2 = tpu.matmul %0, %1, %cst {dimension_numbers = #tpu.dot_dimension_numbers<[1], [0], [0], [1], [0, 0, 1, 1], [], []>} : vector<16x128xf32>, vector<128x128xf32>, vector<16x128xf32> -> vector<16x128xf32>
    %c0_3 = arith.constant 0 : index
    %c0_4 = arith.constant 0 : index
    %3 = vector.load %arg3[%c0_3, %c0_4] : memref<1x128xf32, #tpu.memory_space<vmem>>, vector<1x128xf32>
    %4 = vector.broadcast %3 : vector<1x128xf32> to vector<16x128xf32>
    %5 = arith.addf %2, %4 : vector<16x128xf32>
    %cst_5 = arith.constant 5.000000e-01 : f32
    %6 = vector.broadcast %cst_5 : f32 to vector<16x128xf32>
    %7 = arith.mulf %5, %6 : vector<16x128xf32>
    %cst_6 = arith.constant 0.707106769 : f32
    %8 = vector.broadcast %cst_6 : f32 to vector<16x128xf32>
    %9 = arith.mulf %5, %8 : vector<16x128xf32>
    %10 = math.erf %9 : vector<16x128xf32>
    %cst_7 = arith.constant 1.000000e+00 : f32
    %11 = vector.broadcast %cst_7 : f32 to vector<16x128xf32>
    %12 = arith.addf %11, %10 : vector<16x128xf32>
    %13 = arith.mulf %7, %12 : vector<16x128xf32>
    %cst_8 = arith.constant dense<0.000000e+00> : vector<16xf32>
    %14 = vector.multi_reduction <add>, %13, %cst_8 [1] : vector<16x128xf32> to vector<16xf32>
    %15 = vector.shape_cast %14 : vector<16xf32> to vector<16x1xf32>
    %cst_9 = arith.constant 1.280000e+02 : f32
    %16 = vector.broadcast %cst_9 : f32 to vector<16x1xf32>
    %17 = arith.divf %15, %16 : vector<16x1xf32>
    %18 = vector.broadcast %17 : vector<16x1xf32> to vector<16x128xf32>
    %19 = arith.subf %13, %18 : vector<16x128xf32>
    %20 = arith.mulf %19, %19 : vector<16x128xf32>
    %cst_10 = arith.constant dense<0.000000e+00> : vector<16xf32>
    %21 = vector.multi_reduction <add>, %20, %cst_10 [1] : vector<16x128xf32> to vector<16xf32>
    %22 = vector.shape_cast %21 : vector<16xf32> to vector<16x1xf32>
    %cst_11 = arith.constant 1.280000e+02 : f32
    %23 = vector.broadcast %cst_11 : f32 to vector<16x1xf32>
    %24 = arith.divf %22, %23 : vector<16x1xf32>
    %25 = vector.broadcast %17 : vector<16x1xf32> to vector<16x128xf32>
    %26 = arith.subf %13, %25 : vector<16x128xf32>
    %cst_12 = arith.constant 9.99999996E-13 : f32
    %27 = vector.broadcast %cst_12 : f32 to vector<16x1xf32>
    %28 = arith.addf %24, %27 : vector<16x1xf32>
    %29 = math.rsqrt %28 : vector<16x1xf32>
    %30 = vector.broadcast %29 : vector<16x1xf32> to vector<16x128xf32>
    %31 = arith.mulf %26, %30 : vector<16x128xf32>
    %c0_13 = arith.constant 0 : index
    %c0_14 = arith.constant 0 : index
    %32 = vector.load %arg4[%c0_13, %c0_14] : memref<1x128xf32, #tpu.memory_space<vmem>>, vector<1x128xf32>
    %33 = vector.broadcast %32 : vector<1x128xf32> to vector<16x128xf32>
    %34 = arith.mulf %33, %31 : vector<16x128xf32>
    %c0_15 = arith.constant 0 : index
    %c0_16 = arith.constant 0 : index
    %35 = vector.load %arg5[%c0_15, %c0_16] : memref<1x128xf32, #tpu.memory_space<vmem>>, vector<1x128xf32>
    %36 = vector.broadcast %35 : vector<1x128xf32> to vector<16x128xf32>
    %37 = arith.addf %34, %36 : vector<16x128xf32>
    %c0_17 = arith.constant 0 : index
    %c0_18 = arith.constant 0 : index
    %38 = vector.load %arg6[%c0_17, %c0_18] : memref<16x128xf32, #tpu.memory_space<vmem>>, vector<16x128xf32>
    tpu.vector_store %arg6[%c0_17, %c0_18], %37 {strides = array<i32>} : memref<16x128xf32, #tpu.memory_space<vmem>>, vector<16x128xf32>,
    return
  }
  func.func @transform_0(%arg0: i32) -> (i32, i32) {
    %c0_i32 = arith.constant 0 : i32
    %c0_i32_0 = arith.constant 0 : i32
    return %arg0, %c0_i32 : i32, i32
  }
  func.func @transform_1(%arg0: i32) -> (i32, i32) {
    %c0_i32 = arith.constant 0 : i32
    %c0_i32_0 = arith.constant 0 : i32
    %c0_i32_1 = arith.constant 0 : i32
    return %c0_i32, %c0_i32_0 : i32, i32
  }
  func.func @transform_2(%arg0: i32) -> (i32, i32) {
    %c0_i32 = arith.constant 0 : i32
    %c0_i32_0 = arith.constant 0 : i32
    %c0_i32_1 = arith.constant 0 : i32
    return %c0_i32, %c0_i32_0 : i32, i32
  }
  func.func @transform_3(%arg0: i32) -> (i32, i32) {
    %c0_i32 = arith.constant 0 : i32
    %c0_i32_0 = arith.constant 0 : i32
    %c0_i32_1 = arith.constant 0 : i32
    return %c0_i32, %c0_i32_0 : i32, i32
  }
  func.func @transform_4(%arg0: i32) -> (i32, i32) {
    %c0_i32 = arith.constant 0 : i32
    %c0_i32_0 = arith.constant 0 : i32
    %c0_i32_1 = arith.constant 0 : i32
    return %c0_i32, %c0_i32_0 : i32, i32
  }
  func.func @transform_5(%arg0: i32) -> (i32, i32) {
    %c0_i32 = arith.constant 0 : i32
    %c0_i32_0 = arith.constant 0 : i32
    return %arg0, %c0_i32 : i32, i32
  }
}

</mosaic_0001>

<bundles_post_ra>
// kernel: tpu_custom_call.1
= control target key start
LH: loop header
LB: loop body
LE: loop exit
PB: predicated region body
PF: predicated region fallthrough
CT: control target
= control target key end

     0   :  { %10 = vsyncpa [#allocation3], 0  ;;  %s482_s0 = inlined_call_operand.hbm [shape: f32[16,128], index: 0, kind: input, shape index: {}]   ;;  %s483_s1 = inlined_call_operand.hbm [shape: f32[128,128], index: 1, kind: input, shape index: {}]   ;;  %s484_s2 = inlined_call_operand.vmem [shape: f32[1,128], index: 2, kind: input, shape index: {}]   ;;  %s485_s3 = inlined_call_operand.vmem [shape: f32[1,128], index: 3, kind: input, shape index: {}]   ;;  %s486_s4 = inlined_call_operand.vmem [shape: f32[1,128], index: 4, kind: input, shape index: {}]   ;;  %s487_s5 = inlined_call_operand.hbm [shape: f32[16,128], index: 5, kind: output, shape index: {}]  }
   0x1   :  { %11 = vsyncpa [#allocation6], 0 }
   0x2   :  { %12 = vsyncpa [#allocation4], 0  ;;  %s393_s18 = smov [#allocation2]   ;;  %s321_s22 = scalar_lea.hbm %s482_s0, 256 }
   0x3   :  { %s18_s19 = sshll.u32 %s393_s18, 4  ;;  %p322_p0 = scmp.ne.s32.totalorder %s482_s0, %s321_s22  ;;  %s19_s19 = int_to_ptr.vmem [resolvable:$true] %s18_s19 }
   0x4   :  { %p325_p1 = scmp.lt.u32.totalorder %s321_s22, %s482_s0 }
   0x6   :  { %p327_p2 = pnand %p325_p1, %p322_p0 }
   0x8   :  { %330 = shalt.err (!%p327_p2)
}
   0x9   :  { %s331_s27 = scalar_lea.vmem %s19_s19, 256  ;;  %p336_p4 = scmp.lt.s32.totalorder %s19_s19, %s19_s19 }
   0xa   :  { %p332_p3 = scmp.ne.s32.totalorder %s19_s19, %s331_s27  ;;  %p337_p5 = scmp.lt.s32.totalorder %s331_s27, %s331_s27 }
   0xc   :  { %p338_p6 = por %p337_p5, %p336_p4 }
   0xe   :  { %p339_p7 = pnand %p338_p6, %p332_p3 }
  0x10   :  { %342 = shalt.err (!%p339_p7)
}
  0x11   :  { %s394_s28 = smov 128   ;;  %s395_s29 = smov 8  }
  0x12   :  { %24 = dma.hbm_to_vmem [thread:$0]  %s482_s0, 256, %s19_s19, [#allocation3], %s394_s28, %s394_s28, %s395_s29  }
  0x13   :  { %s396_s7 = smov [#allocation5]   ;;  %s343_s11 = scalar_lea.hbm %s483_s1, 2048 }
  0x14   :  { %s30_s8 = sshll.u32 %s396_s7, 4  ;;  %p344_p8 = scmp.ne.s32.totalorder %s483_s1, %s343_s11  ;;  %s31_s8 = int_to_ptr.vmem [resolvable:$true] %s30_s8 }
  0x15   :  { %p347_p9 = scmp.lt.u32.totalorder %s343_s11, %s483_s1 }
  0x17   :  { %p349_p10 = pnand %p347_p9, %p344_p8 }
  0x19   :  { %352 = shalt.err (!%p349_p10)
}
  0x1a   :  { %s353_s16 = scalar_lea.vmem %s31_s8, 2048  ;;  %p358_p12 = scmp.lt.s32.totalorder %s31_s8, %s31_s8 }
  0x1b   :  { %p354_p11 = scmp.ne.s32.totalorder %s31_s8, %s353_s16  ;;  %p359_p13 = scmp.lt.s32.totalorder %s353_s16, %s353_s16 }
  0x1d   :  { %p360_p0 = por %p359_p13, %p358_p12 }
  0x1f   :  { %p361_p1 = pnand %p360_p0, %p354_p11 }
  0x21   :  { %364 = shalt.err (!%p361_p1)
}
  0x22   :  { %36 = dma.hbm_to_vmem [thread:$0]  %s483_s1, 2048, %s31_s8, [#allocation6], %s394_s28, %s394_s28, %s395_s29  }
  0x23   :  { %387 = dma.done.wait [#allocation3], 256  }
  0x24   :  { %388 = vsyncadd [#allocation3], 4294967040 }
  0x25   :  { %389 = dma.done.wait [#allocation6], 2048  }
  0x26   :  { %390 = vsyncadd [#allocation6], 4294965248  ;;  %v51_v0 = vld [vmem:[#allocation5] sm:$0xff]  ;;  %v52_v1 = vld [vmem:[#allocation5 + $0x8] sm:$0xff]  ;;  %s397_s22 = smov [#allocation7]  }
  0x27   :  { %v53_v2 = vld [vmem:[#allocation5 + $0x10] sm:$0xff]  ;;  %v276_v3 = vpack.c.bf16 %v52_v1, %v51_v0  ;;  %v54_v4 = vld [vmem:[#allocation5 + $0x18] sm:$0xff]  ;;  %v55_v6 = vld [vmem:[#allocation5 + $0x20] sm:$0xff]  ;;  %s207_s23 = sshll.u32 %s397_s22, 4  ;;  %s208_s23 = int_to_ptr.vmem [resolvable:$true] %s207_s23 }
  0x28   :  { %v280_v5 = vpack.c.bf16 %v54_v4, %v53_v2  ;;  %v56_v7 = vld [vmem:[#allocation5 + $0x28] sm:$0xff]  ;;  %v49_v9 = vld [vmem:[#allocation2] sm:$0xff]  ;;  %v58_v11 = vld [vmem:[#allocation5 + $0x38] sm:$0xff]  ;;  %s365_s24 = scalar_lea.vmem %s208_s23, 256  ;;  %p370_p3 = scmp.lt.s32.totalorder %s208_s23, %s208_s23 }
  0x29   :  { %277 = vmatprep.subr.bf16.mxu0 %v276_v3  ;;  %v284_v8 = vpack.c.bf16 %v56_v7, %v55_v6  ;;  %v57_v10 = vld [vmem:[#allocation5 + $0x30] sm:$0xff]  ;;  %273 = vmatprep.mubr.f32.mxu0 %v49_v9  ;;  %v59_v13 = vld [vmem:[#allocation5 + $0x40] sm:$0xff]  ;;  %v60_v14 = vld [vmem:[#allocation5 + $0x48] sm:$0xff]  ;;  %p366_p2 = scmp.ne.s32.totalorder %s208_s23, %s365_s24  ;;  %p371_p4 = scmp.lt.s32.totalorder %s365_s24, %s365_s24 }
  0x2a   :  { %279 = vmatpush3.bf16.msra.mxu0 %v276_v3  ;;  %v288_v12 = vpack.c.bf16 %v58_v11, %v57_v10  ;;  %v292_v15 = vpack.c.bf16 %v60_v14, %v59_v13  ;;  %v61_v16 = vld [vmem:[#allocation5 + $0x50] sm:$0xff]  ;;  %v62_v17 = vld [vmem:[#allocation5 + $0x58] sm:$0xff]  ;;  %v63_v19 = vld [vmem:[#allocation5 + $0x60] sm:$0xff] }
  0x2b   :  { %281 = vmatprep.subr.bf16.mxu0 %v280_v5  ;;  %v296_v18 = vpack.c.bf16 %v62_v17, %v61_v16  ;;  %v64_v20 = vld [vmem:[#allocation5 + $0x68] sm:$0xff]  ;;  %v65_v22 = vld [vmem:[#allocation5 + $0x70] sm:$0xff]  ;;  %v66_v23 = vld [vmem:[#allocation5 + $0x78] sm:$0xff]  ;;  %p372_p5 = por %p371_p4, %p370_p3 }
  0x2c   :  { %v300_v21 = vpack.c.bf16 %v64_v20, %v63_v19  ;;  %v304_v24 = vpack.c.bf16 %v66_v23, %v65_v22  ;;  %v50_v25 = vld [vmem:[#allocation2 + $0x8] sm:$0xff]  ;;  %v220_v26 = vld [vmem:[%s484_s2] ss:$0 sm:$0xff] }
  0x2d   :  { %v221_v56 = vld [vmem:[%s485_s3] ss:$0 sm:$0xff]  ;;  %p373_p6 = pnand %p372_p5, %p366_p2 }
  0x2e   :  { %283 = vmatpush3.bf16.msra.mxu0 %v280_v5  ;;  %v222_v58 = vld [vmem:[%s486_s4] ss:$0 sm:$0xff] }
  0x2f   :  { %285 = vmatprep.subr.bf16.mxu0 %v284_v8 }
  0x32   :  { %287 = vmatpush3.bf16.msra.mxu0 %v284_v8 }
  0x33   :  { %289 = vmatprep.subr.bf16.mxu0 %v288_v12 }
  0x36   :  { %291 = vmatpush3.bf16.msra.mxu0 %v288_v12 }
  0x37   :  { %293 = vmatprep.subr.bf16.mxu0 %v292_v15 }
  0x3a   :  { %295 = vmatpush3.bf16.msra.mxu0 %v292_v15 }
  0x3b   :  { %297 = vmatprep.subr.bf16.mxu0 %v296_v18 }
  0x3e   :  { %299 = vmatpush3.bf16.msra.mxu0 %v296_v18 }
  0x3f   :  { %301 = vmatprep.subr.bf16.mxu0 %v300_v21 }
  0x42   :  { %303 = vmatpush3.bf16.msra.mxu0 %v300_v21 }
  0x43   :  { %305 = vmatprep.subr.bf16.mxu0 %v304_v24 }
  0x46   :  { %307 = vmatpush3.bf16.msra.mxu0 %v304_v24 }
  0x49   :  { %274 = vmatmul.mubr.f32.vlgmr.msra.gmra.mrb[0].mxu0 %v50_v25 }
 0x11c   :  { %v275_v27 = vpop.f32.mrb[0].mxu0 }
 0x11d   :  { %v146_v28 = vadd.f32 %v275_v27, %v220_v26  ;;  %v140_v29 = vpop.f32.mrb[1].mxu0 }
 0x11e   :  { %v141_v30 = vadd.f32 %v220_v26, %v140_v29 }
 0x11f   :  { %v152_v31 = vmul.f32 0.70710677, %v146_v28  ;;  %v150_v39 = vmul.f32 0.5, %v146_v28 }
 0x120   :  { %v151_v32 = vmul.f32 0.70710677, %v141_v30  ;;  %v149_v35 = vmul.f32 0.5, %v141_v30 }
 0x121   :  { %313 = verf.f32 %v152_v31 }
 0x122   :  { %315 = verf.f32 %v151_v32 }
 0x12b   :  { %v314_v33 = vpop.eup %313 }
 0x12c   :  { %v316_v34 = vpop.eup %315  ;;  %v156_v38 = vadd.f32 1.0, %v314_v33 }
 0x12d   :  { %v155_v36 = vadd.f32 1.0, %v316_v34 }
 0x12e   :  { %v158_v40 = vmul.f32 %v156_v38, %v150_v39 }
 0x12f   :  { %v157_v37 = vmul.f32 %v155_v36, %v149_v35 }
 0x131   :  { %159 = vadd.xlane.f32.xlu0 %v157_v37 }
 0x135   :  { %161 = vadd.xlane.f32.xlu0 %v158_v40 }
 0x1be   :  { %v160_v41 = vpop.xlane.xlu0 %159 }
 0x1bf   :  { %v164_v42 = vmul.f32 0.0078125, %v160_v41 }
 0x1c1   :  { %v166_v43 = vsub.f32 %v157_v37, %v164_v42 }
 0x1c2   :  { %v162_v44 = vpop.xlane.xlu0 %161 }
 0x1c3   :  { %v165_v45 = vmul.f32 0.0078125, %v162_v44  ;;  %v168_v46 = vmul.f32 %v166_v43, %v166_v43 }
 0x1c5   :  { %v167_v47 = vsub.f32 %v158_v40, %v165_v45  ;;  %170 = vadd.xlane.f32.xlu1 %v168_v46 }
 0x1c7   :  { %v169_v48 = vmul.f32 %v167_v47, %v167_v47 }
 0x1c9   :  { %172 = vadd.xlane.f32.xlu1 %v169_v48 }
 0x252   :  { %v171_v49 = vpop.xlane.xlu1 %170 }
 0x253   :  { %v174_v50 = vmul.f32 0.0078125, %v171_v49 }
 0x255   :  { %v176_v51 = vadd.f32 1e-12, %v174_v50 }
 0x256   :  { %v173_v52 = vpop.xlane.xlu1 %172 }
 0x257   :  { %317 = vrsqrt.f32 %v176_v51  ;;  %v175_v53 = vmul.f32 0.0078125, %v173_v52 }
 0x259   :  { %v177_v54 = vadd.f32 1e-12, %v175_v53 }
 0x25b   :  { %319 = vrsqrt.f32 %v177_v54 }
 0x261   :  { %v318_v55 = vpop.eup %317 }
 0x262   :  { %v180_v57 = vmul.f32 %v318_v55, %v166_v43 }
 0x264   :  { %v189_v59 = vmul.f32 %v221_v56, %v180_v57 }
 0x265   :  { %v320_v60 = vpop.eup %319 }
 0x266   :  { %v181_v61 = vmul.f32 %v320_v60, %v167_v47  ;;  %v198_v62 = vadd.f32 %v222_v58, %v189_v59 }
 0x268   :  { %v190_v63 = vmul.f32 %v221_v56, %v181_v61  ;;  %200 = vst [vmem:[#allocation7] sm:$0xff] %v198_v62 }
 0x26a   :  { %v199_v0 = vadd.f32 %v222_v58, %v190_v63 }
 0x26c   :  { %201 = vst [vmem:[#allocation7 + $0x8] sm:$0xff] %v199_v0 }
 0x26d   :  { %376 = shalt.err (!%p373_p6)
}
 0x26e   :  { %s377_s25 = scalar_lea.hbm %s487_s5, 256 }
 0x26f   :  { %p378_p7 = scmp.ne.s32.totalorder %s487_s5, %s377_s25  ;;  %p381_p8 = scmp.lt.u32.totalorder %s377_s25, %s487_s5 }
 0x271   :  { %p383_p9 = pnand %p381_p8, %p378_p7 }
 0x273   :  { %386 = shalt.err (!%p383_p9)
}
 0x274   :  { %213 = dma.vmem_to_hbm [thread:$0]  %s208_s23, 256, %s487_s5, [#allocation4], %s394_s28, %s394_s28, %s395_s29  }
 0x275   :  { %391 = dma.done.wait [#allocation4], 256  }
 0x276   :  { %392 = vsyncadd [#allocation4], 4294967040 }
 0x277   :  { %217 = vsyncpa [#allocation3], 1 }
 0x278   :  { %218 = vsyncpa [#allocation6], 1 }
 0x279   :  { %219 = vsyncpa [#allocation4], 1 }

</bundles_post_ra>
